<compile_context>
chip_gen: v5e
topology: v5e:2x2
jax: 0.10.0
libtpu: 0.0.40
codegen_flags: <defaults>
</compile_context>

<pallas_src>
import functools

import jax
import jax.numpy as jnp
from jax.experimental import pallas as pl
from jax.experimental.pallas import tpu as pltpu

IN_FEATURES = 2048
OUT_FEATURES = 2
N_PAD = 128            # lane-dense width of the resident weight tile (MXU-friendly)


def _linear_kernel(x_ref, w_ref, b_ref, o_ref):
    # x_ref: (tb, 2048)  w_ref: (2048, 128)  b_ref: (1, 128)  o_ref: (tb, 2)
    acc = jnp.dot(x_ref[...], w_ref[...], preferred_element_type=jnp.float32)
    acc = acc + b_ref[...]
    # Store only the useful lanes; HBM-visible output stays (B, 2).
    o_ref[...] = acc[:, :OUT_FEATURES].astype(o_ref.dtype)


@functools.lru_cache(maxsize=1)
def _default_tb():
    """Chip-aware batch tile: 1024 on v6e/v7x/v4, 512 on v5e, 256 on v2/v3."""
    try:
        kind = jax.devices()[0].device_kind.lower()
    except Exception:
        return 512
    if "v2" in kind or "v3" in kind:
        return 256            # tiny physical VMEM on very old chips
    if "v5 lite" in kind or "v5e" in kind or "v5litepod" in kind:
        return 512            # slower HBM; per-step overhead already well hidden
    return 1024               # v6e / v7x / v4: amortize per-grid-step overhead


def _choose_tb(batch):
    tb_max = _default_tb()
    if batch <= tb_max:
        # Single block, rounded up to a sublane multiple (partial rows masked).
        return max(8, ((batch + 7) // 8) * 8)
    return tb_max


def prepare_params(w_nk, b, dtype=jnp.float32):
    """One-time conversion of PyTorch-layout params to kernel layout.

    w_nk: [2, 2048] (nn.Linear weight, [out, in])  ->  (2048, 128) lane-padded
    b:    [2]                                      ->  (1, 128)    lane-padded
    Done OUTSIDE the jitted forward so no per-call padding/transpose ops run.
    """
    w_pad = jnp.zeros((IN_FEATURES, N_PAD), dtype).at[:, :OUT_FEATURES].set(
        jnp.asarray(w_nk, dtype).T
    )
    bias_pad = jnp.zeros((1, N_PAD), dtype).at[:, :OUT_FEATURES].set(
        jnp.asarray(b, dtype).reshape(1, OUT_FEATURES)
    )
    return jax.device_put(w_pad), jax.device_put(bias_pad)


def _linear(x, w_pad, bias_pad):
    B = x.shape[0]
    dtype = x.dtype

    tb = _choose_tb(B)
    num_tiles = pl.cdiv(B, tb)

    itemsize = jnp.dtype(dtype).itemsize
    cost = pl.CostEstimate(
        flops=2 * B * IN_FEATURES * OUT_FEATURES,
        bytes_accessed=(
            B * IN_FEATURES            # x read
            + IN_FEATURES * N_PAD      # weight read (once, resident)
            + N_PAD                    # bias read (once)
            + B * OUT_FEATURES         # output write (narrow)
        ) * itemsize,
        transcendentals=0,
    )

    return pl.pallas_call(
        _linear_kernel,
        out_shape=jax.ShapeDtypeStruct((B, OUT_FEATURES), dtype),
        grid_spec=pltpu.PrefetchScalarGridSpec(
            num_scalar_prefetch=0,
            grid=(num_tiles,),
            in_specs=[
                # x: batch-tiled, pipelined; final partial block is clipped on
                # read and its out-of-range output rows are masked on store.
                pl.BlockSpec((tb, IN_FEATURES), lambda i: (i, 0)),
                # weight/bias: constant block index -> DMA'd once, resident.
                pl.BlockSpec((IN_FEATURES, N_PAD), lambda i: (0, 0)),
                pl.BlockSpec((1, N_PAD), lambda i: (0, 0)),
            ],
            out_specs=pl.BlockSpec((tb, OUT_FEATURES), lambda i: (i, 0)),
        ),
        compiler_params=pltpu.CompilerParams(
            dimension_semantics=("parallel",),     # megacore sharding on v7x
            vmem_limit_bytes=32 * 1024 * 1024,     # ~18 MiB resident at tb=1024
        ),
        cost_estimate=cost,
    )(x, w_pad, bias_pad)


@functools.partial(jax.jit, static_argnames=("output_features", "train_robust"))
def fully_connected_forward(x, w_pad, bias_pad, output_features=False,
                            train_robust=False):
    """Equivalent of fully_connected.forward.

    x:        [B, 2048]
    w_pad:    [2048, 128]  (from prepare_params)
    bias_pad: [1, 128]     (from prepare_params)
    """
    if output_features:
        return x
    logits = _linear(x, w_pad, bias_pad)
    if train_robust:
        return [logits, x]
    return logits


def init_params(key):
    """Deterministic init matching nn.Linear(2048, 2) shapes (PyTorch layout)."""
    kw, kb = jax.random.split(key)
    bound = 1.0 / (IN_FEATURES ** 0.5)
    w_nk = jax.random.uniform(
        kw, (OUT_FEATURES, IN_FEATURES), jnp.float32, -bound, bound
    )  # [out, in]
    b = jax.random.uniform(kb, (OUT_FEATURES,), jnp.float32, -bound, bound)
    return w_nk, b


if __name__ == "__main__":
    key = jax.random.PRNGKey(0)
    k_x, k_p, k_x2 = jax.random.split(key, 3)

    w_nk, b = init_params(k_p)
    w_pad, bias_pad = prepare_params(w_nk, b)   # one-time layout conversion

    # Small-batch path (single block, no grid overhead).
    B = 8
    x = jax.random.normal(k_x, (B, IN_FEATURES), jnp.float32)
    out = jax.block_until_ready(fully_connected_forward(x, w_pad, bias_pad))
    ref = x @ w_nk.T + b[None, :]
    assert out.shape == (B, OUT_FEATURES), out.shape
    assert jnp.allclose(out, ref, atol=1e-4, rtol=1e-4), "small-batch mismatch"

    # Multi-tile + ragged final block path (no explicit padding of x).
    B2 = 1030
    x2 = jax.random.normal(k_x2, (B2, IN_FEATURES), jnp.float32)
    out2 = jax.block_until_ready(fully_connected_forward(x2, w_pad, bias_pad))
    ref2 = x2 @ w_nk.T + b[None, :]
    assert out2.shape == (B2, OUT_FEATURES), out2.shape
    assert jnp.allclose(out2, ref2, atol=1e-4, rtol=1e-4), "tiled-batch mismatch"

    # Exercise the other forward branches (pure pass-throughs).
    feats = fully_connected_forward(x, w_pad, bias_pad, output_features=True)
    robust = fully_connected_forward(x, w_pad, bias_pad, train_robust=True)
    jax.block_until_ready(feats)
    jax.block_until_ready(robust[0])

    print("KERNEL_OK")
</pallas_src>

<mosaic_0001>
module attributes {stable_mosaic.version = 11 : i64} {
  func.func @_linear_kernel(%arg0: i32, %arg1: memref<8x2048xf32, #tpu.memory_space<vmem>>, %arg2: memref<2048x128xf32, #tpu.memory_space<vmem>>, %arg3: memref<1x128xf32, #tpu.memory_space<vmem>>, %arg4: memref<8x2xf32, #tpu.memory_space<vmem>>) attributes {dimension_semantics = [#tpu.dimension_semantics<parallel>], iteration_bounds = array<i64: 1>, scalar_prefetch = 0 : i64, scratch_operands = 0 : i64, tpu.core_type = #tpu.core_type<tc>, window_params = [{transform_indices = @transform_0, window_bounds = array<i64: 8, 2048>}, {pipeline_mode = #tpu.pipeline_mode<synchronous>, transform_indices = @transform_1, window_bounds = array<i64: 2048, 128>}, {pipeline_mode = #tpu.pipeline_mode<synchronous>, transform_indices = @transform_2, window_bounds = array<i64: 1, 128>}, {transform_indices = @transform_3, window_bounds = array<i64: 8, 2>}]} {
    %c0 = arith.constant 0 : index
    %c0_0 = arith.constant 0 : index
    %0 = vector.load %arg1[%c0, %c0_0] : memref<8x2048xf32, #tpu.memory_space<vmem>>, vector<8x2048xf32>
    %c0_1 = arith.constant 0 : index
    %c0_2 = arith.constant 0 : index
    %1 = vector.load %arg2[%c0_1, %c0_2] : memref<2048x128xf32, #tpu.memory_space<vmem>>, vector<2048x128xf32>
    %cst = arith.constant dense<0.000000e+00> : vector<8x128xf32>
    %2 = tpu.matmul %0, %1, %cst {dimension_numbers = #tpu.dot_dimension_numbers<[1], [0], [0], [1], [0, 0, 1, 1], [], []>} : vector<8x2048xf32>, vector<2048x128xf32>, vector<8x128xf32> -> vector<8x128xf32>
    %c0_3 = arith.constant 0 : index
    %c0_4 = arith.constant 0 : index
    %3 = vector.load %arg3[%c0_3, %c0_4] : memref<1x128xf32, #tpu.memory_space<vmem>>, vector<1x128xf32>
    %4 = vector.broadcast %3 : vector<1x128xf32> to vector<8x128xf32>
    %5 = arith.addf %2, %4 : vector<8x128xf32>
    %6 = vector.extract_strided_slice %5 {offsets = [0, 0], sizes = [8, 2], strides = [1, 1]} : vector<8x128xf32> to vector<8x2xf32>
    %c0_5 = arith.constant 0 : index
    %c0_6 = arith.constant 0 : index
    %7 = vector.load %arg4[%c0_5, %c0_6] : memref<8x2xf32, #tpu.memory_space<vmem>>, vector<8x2xf32>
    tpu.vector_store %arg4[%c0_5, %c0_6], %6 {strides = array<i32>} : memref<8x2xf32, #tpu.memory_space<vmem>>, vector<8x2xf32>,
    return
  }
  func.func @transform_0(%arg0: i32) -> (i32, i32) {
    %c0_i32 = arith.constant 0 : i32
    %c0_i32_0 = arith.constant 0 : i32
    return %arg0, %c0_i32 : i32, i32
  }
  func.func @transform_1(%arg0: i32) -> (i32, i32) {
    %c0_i32 = arith.constant 0 : i32
    %c0_i32_0 = arith.constant 0 : i32
    %c0_i32_1 = arith.constant 0 : i32
    return %c0_i32, %c0_i32_0 : i32, i32
  }
  func.func @transform_2(%arg0: i32) -> (i32, i32) {
    %c0_i32 = arith.constant 0 : i32
    %c0_i32_0 = arith.constant 0 : i32
    %c0_i32_1 = arith.constant 0 : i32
    return %c0_i32, %c0_i32_0 : i32, i32
  }
  func.func @transform_3(%arg0: i32) -> (i32, i32) {
    %c0_i32 = arith.constant 0 : i32
    %c0_i32_0 = arith.constant 0 : i32
    return %arg0, %c0_i32 : i32, i32
  }
}

</mosaic_0001>

<bundles_post_ra>
// kernel: fully_connected_forward.1
= control target key start
LH: loop header
LB: loop body
LE: loop exit
PB: predicated region body
PF: predicated region fallthrough
CT: control target
= control target key end

     0   :  { %8 = vsyncpa [#allocation3], 0  ;;  %s741_s0 = inlined_call_operand.hbm [shape: f32[8,2048], index: 0, kind: input, shape index: {}]   ;;  %s742_s1 = inlined_call_operand.hbm [shape: f32[2048,128], index: 1, kind: input, shape index: {}]   ;;  %s743_s2 = inlined_call_operand.vmem [shape: f32[1,128], index: 2, kind: input, shape index: {}]   ;;  %s744_s3 = inlined_call_operand.vmem [shape: f32[8,2], index: 3, kind: output, shape index: {}]  }
   0x1   :  { %s15_s14 = sshll.u32 %s741_s0, 4  ;;  %s16_s14 = int_to_ptr.hbm [resolvable:$true] %s15_s14 }
   0x2   :  { %9 = vsyncpa [#allocation5], 0  ;;  %s705_s15 = smov [#allocation2]   ;;  %s25_s19 = sshll.u32 %s742_s1, 4  ;;  %s26_s19 = int_to_ptr.hbm [resolvable:$true] %s25_s19 }
   0x3   :  { %s17_s16 = sshll.u32 %s705_s15, 4  ;;  %s706_s20 = smov [#allocation4]   ;;  %s18_s16 = int_to_ptr.vmem [resolvable:$true] %s17_s16 }
   0x4   :  { %20 = dma.hbm_to_vmem [thread:$0]  %s16_s14, 2048, %s18_s16, [#allocation3]  }
   0x5   :  { %s27_s21 = sshll.u32 %s706_s20, 4  ;;  %s707_s22 = smov 128   ;;  %s28_s21 = int_to_ptr.vmem [resolvable:$true] %s27_s21 }
   0x6   :  { %s708_s23 = smov 8  }
   0x7   :  { %33 = dma.hbm_to_vmem [thread:$0]  %s26_s19, 32768, %s28_s21, [#allocation5], %s707_s22, %s707_s22, %s708_s23  }
   0x8   :  { %701 = dma.done.wait [#allocation3], 2048  }
   0x9   :  { %702 = vsyncadd [#allocation3], 4294965248 }
   0xa   :  { %703 = dma.done.wait [#allocation5], 32768  }
   0xb   :  { %704 = vsyncadd [#allocation5], 4294934528  ;;  %v75_v0 = vld [vmem:[#allocation4 + $0x78] sm:$0xff]  ;;  %v74_v2 = vld [vmem:[#allocation4 + $0x70] sm:$0xff]  ;;  %vm640_vm0 = vcmask 15360  }
   0xc   :  { %v107_v1 = vld [vmem:[#allocation4 + $0x178] sm:$0xff]  ;;  %320 = vmatpush.msra.mxu0 %v75_v0  ;;  %v106_v4 = vld [vmem:[#allocation4 + $0x170] sm:$0xff]  ;;  %v73_v6 = vld [vmem:[#allocation4 + $0x68] sm:$0xff] }
   0xd   :  { %360 = vmatpush.msra.mxu2 %v107_v1  ;;  %v91_v3 = vld [vmem:[#allocation4 + $0xf8] sm:$0xff]  ;;  %v90_v7 = vld [vmem:[#allocation4 + $0xf0] sm:$0xff]  ;;  %v105_v8 = vld [vmem:[#allocation4 + $0x168] sm:$0xff] }
   0xe   :  { %v123_v5 = vld [vmem:[#allocation4 + $0x1f8] sm:$0xff]  ;;  %340 = vmatpush.msra.mxu1 %v91_v3  ;;  %321 = vmatpush.msra.mxu0 %v74_v2  ;;  %v122_v9 = vld [vmem:[#allocation4 + $0x1f0] sm:$0xff]  ;;  %v89_v10 = vld [vmem:[#allocation4 + $0xe8] sm:$0xff] }
   0xf   :  { %380 = vmatpush.msra.mxu3 %v123_v5  ;;  %361 = vmatpush.msra.mxu2 %v106_v4  ;;  %v72_v11 = vld [vmem:[#allocation4 + $0x60] sm:$0xff]  ;;  %v121_v13 = vld [vmem:[#allocation4 + $0x1e8] sm:$0xff]  ;;  %v71_v16 = vld [vmem:[#allocation4 + $0x58] sm:$0xff] }
  0x10   :  { %341 = vmatpush.msra.mxu1 %v90_v7  ;;  %v104_v12 = vld [vmem:[#allocation4 + $0x160] sm:$0xff]  ;;  %322 = vmatpush.msra.mxu0 %v73_v6  ;;  %v103_v17 = vld [vmem:[#allocation4 + $0x158] sm:$0xff]  ;;  %v70_v20 = vld [vmem:[#allocation4 + $0x50] sm:$0xff] }
  0x11   :  { %381 = vmatpush.msra.mxu3 %v122_v9  ;;  %362 = vmatpush.msra.mxu2 %v105_v8  ;;  %v88_v14 = vld [vmem:[#allocation4 + $0xe0] sm:$0xff]  ;;  %v87_v18 = vld [vmem:[#allocation4 + $0xd8] sm:$0xff]  ;;  %v102_v21 = vld [vmem:[#allocation4 + $0x150] sm:$0xff] }
  0x12   :  { %v120_v15 = vld [vmem:[#allocation4 + $0x1e0] sm:$0xff]  ;;  %342 = vmatpush.msra.mxu1 %v89_v10  ;;  %323 = vmatpush.msra.mxu0 %v72_v11  ;;  %v119_v19 = vld [vmem:[#allocation4 + $0x1d8] sm:$0xff]  ;;  %v86_v22 = vld [vmem:[#allocation4 + $0xd0] sm:$0xff] }
  0x13   :  { %382 = vmatpush.msra.mxu3 %v121_v13  ;;  %363 = vmatpush.msra.mxu2 %v104_v12  ;;  %v118_v23 = vld [vmem:[#allocation4 + $0x1d0] sm:$0xff]  ;;  %v69_v24 = vld [vmem:[#allocation4 + $0x48] sm:$0xff]  ;;  %v68_v28 = vld [vmem:[#allocation4 + $0x40] sm:$0xff] }
  0x14   :  { %343 = vmatpush.msra.mxu1 %v88_v14  ;;  %324 = vmatpush.msra.mxu0 %v71_v16  ;;  %v101_v25 = vld [vmem:[#allocation4 + $0x148] sm:$0xff]  ;;  %v100_v29 = vld [vmem:[#allocation4 + $0x140] sm:$0xff]  ;;  %v67_v32 = vld [vmem:[#allocation4 + $0x38] sm:$0xff] }
  0x15   :  { %383 = vmatpush.msra.mxu3 %v120_v15  ;;  %364 = vmatpush.msra.mxu2 %v103_v17  ;;  %v85_v26 = vld [vmem:[#allocation4 + $0xc8] sm:$0xff]  ;;  %v84_v30 = vld [vmem:[#allocation4 + $0xc0] sm:$0xff]  ;;  %v99_v33 = vld [vmem:[#allocation4 + $0x138] sm:$0xff] }
  0x16   :  { %344 = vmatpush.msra.mxu1 %v87_v18  ;;  %325 = vmatpush.msra.mxu0 %v70_v20  ;;  %v117_v27 = vld [vmem:[#allocation4 + $0x1c8] sm:$0xff]  ;;  %v116_v31 = vld [vmem:[#allocation4 + $0x1c0] sm:$0xff]  ;;  %v83_v34 = vld [vmem:[#allocation4 + $0xb8] sm:$0xff] }
  0x17   :  { %384 = vmatpush.msra.mxu3 %v119_v19  ;;  %365 = vmatpush.msra.mxu2 %v102_v21  ;;  %v115_v35 = vld [vmem:[#allocation4 + $0x1b8] sm:$0xff]  ;;  %v66_v36 = vld [vmem:[#allocation4 + $0x30] sm:$0xff]  ;;  %v65_v40 = vld [vmem:[#allocation4 + $0x28] sm:$0xff] }
  0x18   :  { %345 = vmatpush.msra.mxu1 %v86_v22  ;;  %326 = vmatpush.msra.mxu0 %v69_v24  ;;  %v98_v37 = vld [vmem:[#allocation4 + $0x130] sm:$0xff]  ;;  %v97_v41 = vld [vmem:[#allocation4 + $0x128] sm:$0xff]  ;;  %v64_v44 = vld [vmem:[#allocation4 + $0x20] sm:$0xff] }
  0x19   :  { %385 = vmatpush.msra.mxu3 %v118_v23  ;;  %366 = vmatpush.msra.mxu2 %v101_v25  ;;  %v82_v38 = vld [vmem:[#allocation4 + $0xb0] sm:$0xff]  ;;  %v81_v42 = vld [vmem:[#allocation4 + $0xa8] sm:$0xff]  ;;  %v96_v45 = vld [vmem:[#allocation4 + $0x120] sm:$0xff] }
  0x1a   :  { %346 = vmatpush.msra.mxu1 %v85_v26  ;;  %327 = vmatpush.msra.mxu0 %v68_v28  ;;  %v114_v39 = vld [vmem:[#allocation4 + $0x1b0] sm:$0xff]  ;;  %v113_v43 = vld [vmem:[#allocation4 + $0x1a8] sm:$0xff]  ;;  %v80_v46 = vld [vmem:[#allocation4 + $0xa0] sm:$0xff] }
  0x1b   :  { %386 = vmatpush.msra.mxu3 %v117_v27  ;;  %367 = vmatpush.msra.mxu2 %v100_v29  ;;  %v112_v47 = vld [vmem:[#allocation4 + $0x1a0] sm:$0xff]  ;;  %v63_v48 = vld [vmem:[#allocation4 + $0x18] sm:$0xff]  ;;  %v62_v52 = vld [vmem:[#allocation4 + $0x10] sm:$0xff] }
  0x1c   :  { %347 = vmatpush.msra.mxu1 %v84_v30  ;;  %328 = vmatpush.msra.mxu0 %v67_v32  ;;  %v95_v49 = vld [vmem:[#allocation4 + $0x118] sm:$0xff]  ;;  %v94_v53 = vld [vmem:[#allocation4 + $0x110] sm:$0xff]  ;;  %v61_v56 = vld [vmem:[#allocation4 + $0x8] sm:$0xff] }
  0x1d   :  { %387 = vmatpush.msra.mxu3 %v116_v31  ;;  %368 = vmatpush.msra.mxu2 %v99_v33  ;;  %v79_v50 = vld [vmem:[#allocation4 + $0x98] sm:$0xff]  ;;  %v78_v54 = vld [vmem:[#allocation4 + $0x90] sm:$0xff]  ;;  %v93_v57 = vld [vmem:[#allocation4 + $0x108] sm:$0xff] }
  0x1e   :  { %348 = vmatpush.msra.mxu1 %v83_v34  ;;  %329 = vmatpush.msra.mxu0 %v66_v36  ;;  %v111_v51 = vld [vmem:[#allocation4 + $0x198] sm:$0xff]  ;;  %v110_v55 = vld [vmem:[#allocation4 + $0x190] sm:$0xff]  ;;  %v77_v58 = vld [vmem:[#allocation4 + $0x88] sm:$0xff] }
  0x1f   :  { %388 = vmatpush.msra.mxu3 %v115_v35  ;;  %369 = vmatpush.msra.mxu2 %v98_v37  ;;  %v109_v59 = vld [vmem:[#allocation4 + $0x188] sm:$0xff]  ;;  %v60_v60 = vld [vmem:[#allocation4] sm:$0xff]  ;;  %v139_v62 = vld [vmem:[#allocation4 + $0x278] sm:$0xff] }
  0x20   :  { %349 = vmatpush.msra.mxu1 %v82_v38  ;;  %330 = vmatpush.msra.mxu0 %v65_v40  ;;  %v92_v61 = vld [vmem:[#allocation4 + $0x100] sm:$0xff]  ;;  %v171_v63 = vld [vmem:[#allocation4 + $0x378] sm:$0xff]  ;;  %v138_v2 = vld [vmem:[#allocation4 + $0x270] sm:$0xff] }
  0x21   :  { %389 = vmatpush.msra.mxu3 %v114_v39  ;;  %370 = vmatpush.msra.mxu2 %v97_v41  ;;  %v76_v0 = vld [vmem:[#allocation4 + $0x80] sm:$0xff]  ;;  %v155_v3 = vld [vmem:[#allocation4 + $0x2f8] sm:$0xff]  ;;  %v170_v4 = vld [vmem:[#allocation4 + $0x370] sm:$0xff] }
  0x22   :  { %350 = vmatpush.msra.mxu1 %v81_v42  ;;  %331 = vmatpush.msra.mxu0 %v64_v44  ;;  %v108_v1 = vld [vmem:[#allocation4 + $0x180] sm:$0xff]  ;;  %v187_v5 = vld [vmem:[#allocation4 + $0x3f8] sm:$0xff]  ;;  %v137_v6 = vld [vmem:[#allocation4 + $0x268] sm:$0xff] }
  0x23   :  { %390 = vmatpush.msra.mxu3 %v113_v43  ;;  %371 = vmatpush.msra.mxu2 %v96_v45  ;;  %v154_v7 = vld [vmem:[#allocation4 + $0x2f0] sm:$0xff]  ;;  %v169_v8 = vld [vmem:[#allocation4 + $0x368] sm:$0xff]  ;;  %v136_v10 = vld [vmem:[#allocation4 + $0x260] sm:$0xff] }
  0x24   :  { %351 = vmatpush.msra.mxu1 %v80_v46  ;;  %332 = vmatpush.msra.mxu0 %v63_v48  ;;  %v186_v9 = vld [vmem:[#allocation4 + $0x3f0] sm:$0xff]  ;;  %v153_v11 = vld [vmem:[#allocation4 + $0x2e8] sm:$0xff]  ;;  %v168_v12 = vld [vmem:[#allocation4 + $0x360] sm:$0xff] }
  0x25   :  { %391 = vmatpush.msra.mxu3 %v112_v47  ;;  %372 = vmatpush.msra.mxu2 %v95_v49  ;;  %v185_v13 = vld [vmem:[#allocation4 + $0x3e8] sm:$0xff]  ;;  %v135_v14 = vld [vmem:[#allocation4 + $0x258] sm:$0xff]  ;;  %v152_v15 = vld [vmem:[#allocation4 + $0x2e0] sm:$0xff] }
  0x26   :  { %352 = vmatpush.msra.mxu1 %v79_v50  ;;  %333 = vmatpush.msra.mxu0 %v62_v52  ;;  %v167_v16 = vld [vmem:[#allocation4 + $0x358] sm:$0xff]  ;;  %v184_v17 = vld [vmem:[#allocation4 + $0x3e0] sm:$0xff]  ;;  %v134_v18 = vld [vmem:[#allocation4 + $0x250] sm:$0xff] }
  0x27   :  { %392 = vmatpush.msra.mxu3 %v111_v51  ;;  %373 = vmatpush.msra.mxu2 %v94_v53  ;;  %v151_v19 = vld [vmem:[#allocation4 + $0x2d8] sm:$0xff]  ;;  %v166_v20 = vld [vmem:[#allocation4 + $0x350] sm:$0xff]  ;;  %v133_v22 = vld [vmem:[#allocation4 + $0x248] sm:$0xff] }
  0x28   :  { %353 = vmatpush.msra.mxu1 %v78_v54  ;;  %334 = vmatpush.msra.mxu0 %v61_v56  ;;  %v183_v21 = vld [vmem:[#allocation4 + $0x3d8] sm:$0xff]  ;;  %v150_v23 = vld [vmem:[#allocation4 + $0x2d0] sm:$0xff]  ;;  %v165_v24 = vld [vmem:[#allocation4 + $0x348] sm:$0xff] }
  0x29   :  { %393 = vmatpush.msra.mxu3 %v110_v55  ;;  %374 = vmatpush.msra.mxu2 %v93_v57  ;;  %v182_v25 = vld [vmem:[#allocation4 + $0x3d0] sm:$0xff]  ;;  %v132_v26 = vld [vmem:[#allocation4 + $0x240] sm:$0xff]  ;;  %v149_v27 = vld [vmem:[#allocation4 + $0x2c8] sm:$0xff] }
  0x2a   :  { %354 = vmatpush.msra.mxu1 %v77_v58  ;;  %335 = vmatpush.msra.mxu0 %v60_v60  ;;  %v164_v28 = vld [vmem:[#allocation4 + $0x340] sm:$0xff]  ;;  %v181_v29 = vld [vmem:[#allocation4 + $0x3c8] sm:$0xff]  ;;  %v131_v30 = vld [vmem:[#allocation4 + $0x238] sm:$0xff] }
  0x2b   :  { %394 = vmatpush.msra.mxu3 %v109_v59  ;;  %375 = vmatpush.msra.mxu2 %v92_v61  ;;  %v148_v31 = vld [vmem:[#allocation4 + $0x2c0] sm:$0xff]  ;;  %v163_v32 = vld [vmem:[#allocation4 + $0x338] sm:$0xff]  ;;  %v130_v34 = vld [vmem:[#allocation4 + $0x230] sm:$0xff] }
  0x2c   :  { %400 = vmatpush.msrb.mxu0 %v139_v62  ;;  %355 = vmatpush.msra.mxu1 %v76_v0  ;;  %v180_v33 = vld [vmem:[#allocation4 + $0x3c0] sm:$0xff]  ;;  %v147_v35 = vld [vmem:[#allocation4 + $0x2b8] sm:$0xff]  ;;  %v162_v36 = vld [vmem:[#allocation4 + $0x330] sm:$0xff] }
  0x2d   :  { %440 = vmatpush.msrb.mxu2 %v171_v63  ;;  %395 = vmatpush.msra.mxu3 %v108_v1  ;;  %v179_v37 = vld [vmem:[#allocation4 + $0x3b8] sm:$0xff]  ;;  %v129_v38 = vld [vmem:[#allocation4 + $0x228] sm:$0xff]  ;;  %v146_v39 = vld [vmem:[#allocation4 + $0x2b0] sm:$0xff] }
  0x2e   :  { %401 = vmatpush.msrb.mxu0 %v138_v2  ;;  %420 = vmatpush.msrb.mxu1 %v155_v3  ;;  %v161_v40 = vld [vmem:[#allocation4 + $0x328] sm:$0xff]  ;;  %v178_v41 = vld [vmem:[#allocation4 + $0x3b0] sm:$0xff]  ;;  %v128_v42 = vld [vmem:[#allocation4 + $0x220] sm:$0xff] }
  0x2f   :  { %441 = vmatpush.msrb.mxu2 %v170_v4  ;;  %460 = vmatpush.msrb.mxu3 %v187_v5  ;;  %v145_v43 = vld [vmem:[#allocation4 + $0x2a8] sm:$0xff]  ;;  %v160_v44 = vld [vmem:[#allocation4 + $0x320] sm:$0xff]  ;;  %v127_v46 = vld [vmem:[#allocation4 + $0x218] sm:$0xff] }
  0x30   :  { %402 = vmatpush.msrb.mxu0 %v137_v6  ;;  %421 = vmatpush.msrb.mxu1 %v154_v7  ;;  %v177_v45 = vld [vmem:[#allocation4 + $0x3a8] sm:$0xff]  ;;  %v144_v47 = vld [vmem:[#allocation4 + $0x2a0] sm:$0xff]  ;;  %v159_v48 = vld [vmem:[#allocation4 + $0x318] sm:$0xff] }
  0x31   :  { %442 = vmatpush.msrb.mxu2 %v169_v8  ;;  %461 = vmatpush.msrb.mxu3 %v186_v9  ;;  %v176_v49 = vld [vmem:[#allocation4 + $0x3a0] sm:$0xff]  ;;  %v126_v50 = vld [vmem:[#allocation4 + $0x210] sm:$0xff]  ;;  %v143_v51 = vld [vmem:[#allocation4 + $0x298] sm:$0xff] }
  0x32   :  { %403 = vmatpush.msrb.mxu0 %v136_v10  ;;  %422 = vmatpush.msrb.mxu1 %v153_v11  ;;  %v158_v52 = vld [vmem:[#allocation4 + $0x310] sm:$0xff]  ;;  %v175_v53 = vld [vmem:[#allocation4 + $0x398] sm:$0xff]  ;;  %v125_v54 = vld [vmem:[#allocation4 + $0x208] sm:$0xff] }
  0x33   :  { %443 = vmatpush.msrb.mxu2 %v168_v12  ;;  %462 = vmatpush.msrb.mxu3 %v185_v13  ;;  %v142_v55 = vld [vmem:[#allocation4 + $0x290] sm:$0xff]  ;;  %v157_v56 = vld [vmem:[#allocation4 + $0x308] sm:$0xff]  ;;  %v124_v58 = vld [vmem:[#allocation4 + $0x200] sm:$0xff] }
  0x34   :  { %404 = vmatpush.msrb.mxu0 %v135_v14  ;;  %423 = vmatpush.msrb.mxu1 %v152_v15  ;;  %v174_v57 = vld [vmem:[#allocation4 + $0x390] sm:$0xff]  ;;  %v141_v59 = vld [vmem:[#allocation4 + $0x288] sm:$0xff]  ;;  %v156_v60 = vld [vmem:[#allocation4 + $0x300] sm:$0xff] }
  0x35   :  { %444 = vmatpush.msrb.mxu2 %v167_v16  ;;  %463 = vmatpush.msrb.mxu3 %v184_v17  ;;  %v173_v61 = vld [vmem:[#allocation4 + $0x388] sm:$0xff]  ;;  %v44_v62 = vld [vmem:[#allocation2] sm:$0xff]  ;;  %v46_v63 = vld [vmem:[#allocation2 + $0x10] sm:$0xff] }
  0x36   :  { %405 = vmatpush.msrb.mxu0 %v134_v18  ;;  %424 = vmatpush.msrb.mxu1 %v151_v19  ;;  %v203_v0 = vld [vmem:[#allocation4 + $0x478] sm:$0xff]  ;;  %v140_v2 = vld [vmem:[#allocation4 + $0x280] sm:$0xff]  ;;  %v45_v4 = vld [vmem:[#allocation2 + $0x8] sm:$0xff] }
  0x37   :  { %445 = vmatpush.msrb.mxu2 %v166_v20  ;;  %464 = vmatpush.msrb.mxu3 %v183_v21  ;;  %v235_v1 = vld [vmem:[#allocation4 + $0x578] sm:$0xff]  ;;  %v172_v3 = vld [vmem:[#allocation4 + $0x380] sm:$0xff]  ;;  %v202_v6 = vld [vmem:[#allocation4 + $0x470] sm:$0xff] }
  0x38   :  { %406 = vmatpush.msrb.mxu0 %v133_v22  ;;  %425 = vmatpush.msrb.mxu1 %v150_v23  ;;  %v47_v5 = vld [vmem:[#allocation2 + $0x18] sm:$0xff]  ;;  %v234_v8 = vld [vmem:[#allocation4 + $0x570] sm:$0xff]  ;;  %v201_v10 = vld [vmem:[#allocation4 + $0x468] sm:$0xff] }
  0x39   :  { %446 = vmatpush.msrb.mxu2 %v165_v24  ;;  %465 = vmatpush.msrb.mxu3 %v182_v25  ;;  %v219_v7 = vld [vmem:[#allocation4 + $0x4f8] sm:$0xff]  ;;  %v218_v11 = vld [vmem:[#allocation4 + $0x4f0] sm:$0xff]  ;;  %v233_v12 = vld [vmem:[#allocation4 + $0x568] sm:$0xff] }
  0x3a   :  { %407 = vmatpush.msrb.mxu0 %v132_v26  ;;  %426 = vmatpush.msrb.mxu1 %v149_v27  ;;  %v251_v9 = vld [vmem:[#allocation4 + $0x5f8] sm:$0xff]  ;;  %v250_v13 = vld [vmem:[#allocation4 + $0x5f0] sm:$0xff]  ;;  %v200_v14 = vld [vmem:[#allocation4 + $0x460] sm:$0xff] }
  0x3b   :  { %447 = vmatpush.msrb.mxu2 %v164_v28  ;;  %466 = vmatpush.msrb.mxu3 %v181_v29  ;;  %v217_v15 = vld [vmem:[#allocation4 + $0x4e8] sm:$0xff]  ;;  %v232_v16 = vld [vmem:[#allocation4 + $0x560] sm:$0xff]  ;;  %v50_v18 = vld [vmem:[#allocation2 + $0x30] sm:$0xff] }
  0x3c   :  { %408 = vmatpush.msrb.mxu0 %v131_v30  ;;  %427 = vmatpush.msrb.mxu1 %v148_v31  ;;  %v249_v17 = vld [vmem:[#allocation4 + $0x5e8] sm:$0xff]  ;;  %v199_v19 = vld [vmem:[#allocation4 + $0x458] sm:$0xff]  ;;  %v216_v20 = vld [vmem:[#allocation4 + $0x4e0] sm:$0xff] }
  0x3d   :  { %448 = vmatpush.msrb.mxu2 %v163_v32  ;;  %467 = vmatpush.msrb.mxu3 %v180_v33  ;;  %v231_v21 = vld [vmem:[#allocation4 + $0x558] sm:$0xff]  ;;  %v248_v22 = vld [vmem:[#allocation4 + $0x5e0] sm:$0xff]  ;;  %v198_v25 = vld [vmem:[#allocation4 + $0x450] sm:$0xff] }
  0x3e   :  { %409 = vmatpush.msrb.mxu0 %v130_v34  ;;  %428 = vmatpush.msrb.mxu1 %v147_v35  ;;  %v48_v23 = vld [vmem:[#allocation2 + $0x20] sm:$0xff]  ;;  %v51_v24 = vld [vmem:[#allocation2 + $0x38] sm:$0xff]  ;;  %v230_v27 = vld [vmem:[#allocation4 + $0x550] sm:$0xff] }
  0x3f   :  { %449 = vmatpush.msrb.mxu2 %v162_v36  ;;  %468 = vmatpush.msrb.mxu3 %v179_v37  ;;  %v215_v26 = vld [vmem:[#allocation4 + $0x4d8] sm:$0xff]  ;;  %v49_v29 = vld [vmem:[#allocation2 + $0x28] sm:$0xff]  ;;  %v214_v31 = vld [vmem:[#allocation4 + $0x4d0] sm:$0xff] }
  0x40   :  { %410 = vmatpush.msrb.mxu0 %v129_v38  ;;  %429 = vmatpush.msrb.mxu1 %v146_v39  ;;  %v247_v28 = vld [vmem:[#allocation4 + $0x5d8] sm:$0xff]  ;;  %v197_v30 = vld [vmem:[#allocation4 + $0x448] sm:$0xff]  ;;  %v246_v33 = vld [vmem:[#allocation4 + $0x5d0] sm:$0xff] }
  0x41   :  { %450 = vmatpush.msrb.mxu2 %v161_v40  ;;  %469 = vmatpush.msrb.mxu3 %v178_v41  ;;  %v229_v32 = vld [vmem:[#allocation4 + $0x548] sm:$0xff]  ;;  %v196_v34 = vld [vmem:[#allocation4 + $0x440] sm:$0xff]  ;;  %v195_v38 = vld [vmem:[#allocation4 + $0x438] sm:$0xff] }
  0x42   :  { %411 = vmatpush.msrb.mxu0 %v128_v42  ;;  %430 = vmatpush.msrb.mxu1 %v145_v43  ;;  %v213_v35 = vld [vmem:[#allocation4 + $0x4c8] sm:$0xff]  ;;  %v228_v36 = vld [vmem:[#allocation4 + $0x540] sm:$0xff]  ;;  %v227_v40 = vld [vmem:[#allocation4 + $0x538] sm:$0xff] }
  0x43   :  { %451 = vmatpush.msrb.mxu2 %v160_v44  ;;  %470 = vmatpush.msrb.mxu3 %v177_v45  ;;  %v245_v37 = vld [vmem:[#allocation4 + $0x5c8] sm:$0xff]  ;;  %v212_v39 = vld [vmem:[#allocation4 + $0x4c0] sm:$0xff]  ;;  %v194_v42 = vld [vmem:[#allocation4 + $0x430] sm:$0xff] }
  0x44   :  { %412 = vmatpush.msrb.mxu0 %v127_v46  ;;  %431 = vmatpush.msrb.mxu1 %v144_v47  ;;  %v244_v41 = vld [vmem:[#allocation4 + $0x5c0] sm:$0xff]  ;;  %v211_v43 = vld [vmem:[#allocation4 + $0x4b8] sm:$0xff]  ;;  %v226_v44 = vld [vmem:[#allocation4 + $0x530] sm:$0xff] }
  0x45   :  { %452 = vmatpush.msrb.mxu2 %v159_v48  ;;  %471 = vmatpush.msrb.mxu3 %v176_v49  ;;  %v243_v45 = vld [vmem:[#allocation4 + $0x5b8] sm:$0xff]  ;;  %v193_v46 = vld [vmem:[#allocation4 + $0x428] sm:$0xff]  ;;  %v210_v47 = vld [vmem:[#allocation4 + $0x4b0] sm:$0xff] }
  0x46   :  { %413 = vmatpush.msrb.mxu0 %v126_v50  ;;  %432 = vmatpush.msrb.mxu1 %v143_v51  ;;  %v225_v48 = vld [vmem:[#allocation4 + $0x528] sm:$0xff]  ;;  %v242_v49 = vld [vmem:[#allocation4 + $0x5b0] sm:$0xff]  ;;  %v192_v50 = vld [vmem:[#allocation4 + $0x420] sm:$0xff] }
  0x47   :  { %453 = vmatpush.msrb.mxu2 %v158_v52  ;;  %472 = vmatpush.msrb.mxu3 %v175_v53  ;;  %v209_v51 = vld [vmem:[#allocation4 + $0x4a8] sm:$0xff]  ;;  %v224_v52 = vld [vmem:[#allocation4 + $0x520] sm:$0xff] }
  0x48   :  { %414 = vmatpush.msrb.mxu0 %v125_v54  ;;  %433 = vmatpush.msrb.mxu1 %v142_v55  ;;  %v241_v53 = vld [vmem:[#allocation4 + $0x5a8] sm:$0xff]  ;;  %v191_v54 = vld [vmem:[#allocation4 + $0x418] sm:$0xff]  ;;  %v208_v55 = vld [vmem:[#allocation4 + $0x4a0] sm:$0xff] }
  0x49   :  { %454 = vmatpush.msrb.mxu2 %v157_v56  ;;  %473 = vmatpush.msrb.mxu3 %v174_v57  ;;  %v223_v56 = vld [vmem:[#allocation4 + $0x518] sm:$0xff]  ;;  %v240_v57 = vld [vmem:[#allocation4 + $0x5a0] sm:$0xff] }
  0x4a   :  { %415 = vmatpush.msrb.mxu0 %v124_v58  ;;  %434 = vmatpush.msrb.mxu1 %v141_v59  ;;  %v190_v58 = vld [vmem:[#allocation4 + $0x410] sm:$0xff]  ;;  %v207_v59 = vld [vmem:[#allocation4 + $0x498] sm:$0xff] }
  0x4b   :  { %455 = vmatpush.msrb.mxu2 %v156_v60  ;;  %474 = vmatpush.msrb.mxu3 %v173_v61  ;;  %v222_v60 = vld [vmem:[#allocation4 + $0x510] sm:$0xff]  ;;  %v239_v61 = vld [vmem:[#allocation4 + $0x598] sm:$0xff] }
  0x4c   :  { %336 = vmatmul.f32.vlgmr.msra.gmra.mxu0 %v44_v62  ;;  %376 = vmatmul.f32.vlgmr.msra.gmra.mxu2 %v46_v63  ;;  %v189_v62 = vld [vmem:[#allocation4 + $0x408] sm:$0xff]  ;;  %v206_v63 = vld [vmem:[#allocation4 + $0x490] sm:$0xff] }
  0x4d   :  { %480 = vmatpush.msra.mxu0 %v203_v0  ;;  %520 = vmatpush.msra.mxu2 %v235_v1  ;;  %v221_v0 = vld [vmem:[#allocation4 + $0x508] sm:$0xff]  ;;  %v238_v1 = vld [vmem:[#allocation4 + $0x590] sm:$0xff] }
  0x4e   :  { %435 = vmatpush.msrb.mxu1 %v140_v2  ;;  %475 = vmatpush.msrb.mxu3 %v172_v3  ;;  %v188_v2 = vld [vmem:[#allocation4 + $0x400] sm:$0xff]  ;;  %v205_v3 = vld [vmem:[#allocation4 + $0x488] sm:$0xff] }
  0x4f   :  { %356 = vmatmul.f32.vlgmr.msra.gmra.mxu1 %v45_v4  ;;  %396 = vmatmul.f32.vlgmr.msra.gmra.mxu3 %v47_v5  ;;  %v220_v4 = vld [vmem:[#allocation4 + $0x500] sm:$0xff]  ;;  %v237_v5 = vld [vmem:[#allocation4 + $0x588] sm:$0xff] }
  0x50   :  { %481 = vmatpush.msra.mxu0 %v202_v6  ;;  %500 = vmatpush.msra.mxu1 %v219_v7  ;;  %v52_v6 = vld [vmem:[#allocation2 + $0x40] sm:$0xff]  ;;  %v54_v7 = vld [vmem:[#allocation2 + $0x50] sm:$0xff] }
  0x51   :  { %521 = vmatpush.msra.mxu2 %v234_v8  ;;  %540 = vmatpush.msra.mxu3 %v251_v9  ;;  %v267_v8 = vld [vmem:[#allocation4 + $0x678] sm:$0xff] }
  0x52   :  { %482 = vmatpush.msra.mxu0 %v201_v10  ;;  %501 = vmatpush.msra.mxu1 %v218_v11  ;;  %v299_v9 = vld [vmem:[#allocation4 + $0x778] sm:$0xff]  ;;  %v204_v10 = vld [vmem:[#allocation4 + $0x480] sm:$0xff] }
  0x53   :  { %522 = vmatpush.msra.mxu2 %v233_v12  ;;  %541 = vmatpush.msra.mxu3 %v250_v13  ;;  %v236_v11 = vld [vmem:[#allocation4 + $0x580] sm:$0xff]  ;;  %v53_v12 = vld [vmem:[#allocation2 + $0x48] sm:$0xff]  ;;  %v55_v13 = vld [vmem:[#allocation2 + $0x58] sm:$0xff] }
  0x54   :  { %483 = vmatpush.msra.mxu0 %v200_v14  ;;  %502 = vmatpush.msra.mxu1 %v217_v15  ;;  %v266_v14 = vld [vmem:[#allocation4 + $0x670] sm:$0xff]  ;;  %v283_v15 = vld [vmem:[#allocation4 + $0x6f8] sm:$0xff] }
  0x55   :  { %523 = vmatpush.msra.mxu2 %v232_v16  ;;  %542 = vmatpush.msra.mxu3 %v249_v17  ;;  %v298_v16 = vld [vmem:[#allocation4 + $0x770] sm:$0xff]  ;;  %v315_v17 = vld [vmem:[#allocation4 + $0x7f8] sm:$0xff] }
  0x56   :  { %456 = vmatmul.f32.vlgmr.msrb.gmra.mxu2 %v50_v18  ;;  %484 = vmatpush.msra.mxu0 %v199_v19  ;;  %v265_v18 = vld [vmem:[#allocation4 + $0x668] sm:$0xff]  ;;  %v282_v19 = vld [vmem:[#allocation4 + $0x6f0] sm:$0xff] }
  0x57   :  { %503 = vmatpush.msra.mxu1 %v216_v20  ;;  %524 = vmatpush.msra.mxu2 %v231_v21  ;;  %v297_v20 = vld [vmem:[#allocation4 + $0x768] sm:$0xff]  ;;  %v314_v21 = vld [vmem:[#allocation4 + $0x7f0] sm:$0xff] }
  0x58   :  { %543 = vmatpush.msra.mxu3 %v248_v22  ;;  %416 = vmatmul.f32.vlgmr.msrb.gmra.mxu0 %v48_v23  ;;  %v264_v22 = vld [vmem:[#allocation4 + $0x660] sm:$0xff]  ;;  %v281_v23 = vld [vmem:[#allocation4 + $0x6e8] sm:$0xff] }
  0x59   :  { %476 = vmatmul.f32.vlgmr.msrb.gmra.mxu3 %v51_v24  ;;  %485 = vmatpush.msra.mxu0 %v198_v25  ;;  %v296_v24 = vld [vmem:[#allocation4 + $0x760] sm:$0xff]  ;;  %v313_v25 = vld [vmem:[#allocation4 + $0x7e8] sm:$0xff] }
  0x5a   :  { %504 = vmatpush.msra.mxu1 %v215_v26  ;;  %525 = vmatpush.msra.mxu2 %v230_v27  ;;  %v263_v26 = vld [vmem:[#allocation4 + $0x658] sm:$0xff]  ;;  %v280_v27 = vld [vmem:[#allocation4 + $0x6e0] sm:$0xff] }
  0x5b   :  { %544 = vmatpush.msra.mxu3 %v247_v28  ;;  %436 = vmatmul.f32.vlgmr.msrb.gmra.mxu1 %v49_v29  ;;  %v295_v28 = vld [vmem:[#allocation4 + $0x758] sm:$0xff]  ;;  %v312_v29 = vld [vmem:[#allocation4 + $0x7e0] sm:$0xff] }
  0x5c   :  { %486 = vmatpush.msra.mxu0 %v197_v30  ;;  %505 = vmatpush.msra.mxu1 %v214_v31  ;;  %v262_v30 = vld [vmem:[#allocation4 + $0x650] sm:$0xff]  ;;  %v279_v31 = vld [vmem:[#allocation4 + $0x6d8] sm:$0xff] }
  0x5d   :  { %526 = vmatpush.msra.mxu2 %v229_v32  ;;  %545 = vmatpush.msra.mxu3 %v246_v33  ;;  %v294_v32 = vld [vmem:[#allocation4 + $0x750] sm:$0xff]  ;;  %v311_v33 = vld [vmem:[#allocation4 + $0x7d8] sm:$0xff] }
  0x5e   :  { %487 = vmatpush.msra.mxu0 %v196_v34  ;;  %506 = vmatpush.msra.mxu1 %v213_v35  ;;  %v261_v34 = vld [vmem:[#allocation4 + $0x648] sm:$0xff]  ;;  %v278_v35 = vld [vmem:[#allocation4 + $0x6d0] sm:$0xff] }
  0x5f   :  { %527 = vmatpush.msra.mxu2 %v228_v36  ;;  %546 = vmatpush.msra.mxu3 %v245_v37  ;;  %v293_v36 = vld [vmem:[#allocation4 + $0x748] sm:$0xff]  ;;  %v310_v37 = vld [vmem:[#allocation4 + $0x7d0] sm:$0xff] }
  0x60   :  { %488 = vmatpush.msra.mxu0 %v195_v38  ;;  %507 = vmatpush.msra.mxu1 %v212_v39  ;;  %v260_v38 = vld [vmem:[#allocation4 + $0x640] sm:$0xff]  ;;  %v277_v39 = vld [vmem:[#allocation4 + $0x6c8] sm:$0xff] }
  0x61   :  { %528 = vmatpush.msra.mxu2 %v227_v40  ;;  %547 = vmatpush.msra.mxu3 %v244_v41  ;;  %v292_v40 = vld [vmem:[#allocation4 + $0x740] sm:$0xff]  ;;  %v309_v41 = vld [vmem:[#allocation4 + $0x7c8] sm:$0xff] }
  0x62   :  { %489 = vmatpush.msra.mxu0 %v194_v42  ;;  %508 = vmatpush.msra.mxu1 %v211_v43  ;;  %v259_v42 = vld [vmem:[#allocation4 + $0x638] sm:$0xff]  ;;  %v276_v43 = vld [vmem:[#allocation4 + $0x6c0] sm:$0xff] }
  0x63   :  { %529 = vmatpush.msra.mxu2 %v226_v44  ;;  %548 = vmatpush.msra.mxu3 %v243_v45  ;;  %v291_v44 = vld [vmem:[#allocation4 + $0x738] sm:$0xff]  ;;  %v308_v45 = vld [vmem:[#allocation4 + $0x7c0] sm:$0xff] }
  0x64   :  { %490 = vmatpush.msra.mxu0 %v193_v46  ;;  %509 = vmatpush.msra.mxu1 %v210_v47  ;;  %v258_v46 = vld [vmem:[#allocation4 + $0x630] sm:$0xff]  ;;  %v275_v47 = vld [vmem:[#allocation4 + $0x6b8] sm:$0xff] }
  0x65   :  { %530 = vmatpush.msra.mxu2 %v225_v48  ;;  %549 = vmatpush.msra.mxu3 %v242_v49  ;;  %v290_v48 = vld [vmem:[#allocation4 + $0x730] sm:$0xff]  ;;  %v307_v49 = vld [vmem:[#allocation4 + $0x7b8] sm:$0xff] }
  0x66   :  { %491 = vmatpush.msra.mxu0 %v192_v50  ;;  %510 = vmatpush.msra.mxu1 %v209_v51  ;;  %v257_v50 = vld [vmem:[#allocation4 + $0x628] sm:$0xff]  ;;  %v274_v51 = vld [vmem:[#allocation4 + $0x6b0] sm:$0xff] }
  0x67   :  { %531 = vmatpush.msra.mxu2 %v224_v52  ;;  %550 = vmatpush.msra.mxu3 %v241_v53  ;;  %v289_v52 = vld [vmem:[#allocation4 + $0x728] sm:$0xff]  ;;  %v306_v53 = vld [vmem:[#allocation4 + $0x7b0] sm:$0xff] }
  0x68   :  { %492 = vmatpush.msra.mxu0 %v191_v54  ;;  %511 = vmatpush.msra.mxu1 %v208_v55  ;;  %v256_v54 = vld [vmem:[#allocation4 + $0x620] sm:$0xff]  ;;  %v273_v55 = vld [vmem:[#allocation4 + $0x6a8] sm:$0xff] }
  0x69   :  { %532 = vmatpush.msra.mxu2 %v223_v56  ;;  %551 = vmatpush.msra.mxu3 %v240_v57  ;;  %v288_v56 = vld [vmem:[#allocation4 + $0x720] sm:$0xff]  ;;  %v305_v57 = vld [vmem:[#allocation4 + $0x7a8] sm:$0xff] }
  0x6a   :  { %493 = vmatpush.msra.mxu0 %v190_v58  ;;  %512 = vmatpush.msra.mxu1 %v207_v59  ;;  %v255_v58 = vld [vmem:[#allocation4 + $0x618] sm:$0xff]  ;;  %v272_v59 = vld [vmem:[#allocation4 + $0x6a0] sm:$0xff] }
  0x6b   :  { %533 = vmatpush.msra.mxu2 %v222_v60  ;;  %552 = vmatpush.msra.mxu3 %v239_v61  ;;  %v287_v60 = vld [vmem:[#allocation4 + $0x718] sm:$0xff]  ;;  %v304_v61 = vld [vmem:[#allocation4 + $0x7a0] sm:$0xff] }
  0x6c   :  { %494 = vmatpush.msra.mxu0 %v189_v62  ;;  %513 = vmatpush.msra.mxu1 %v206_v63  ;;  %v254_v62 = vld [vmem:[#allocation4 + $0x610] sm:$0xff]  ;;  %v271_v63 = vld [vmem:[#allocation4 + $0x698] sm:$0xff] }
  0x6d   :  { %534 = vmatpush.msra.mxu2 %v221_v0  ;;  %553 = vmatpush.msra.mxu3 %v238_v1  ;;  %v286_v0 = vld [vmem:[#allocation4 + $0x710] sm:$0xff]  ;;  %v303_v1 = vld [vmem:[#allocation4 + $0x798] sm:$0xff] }
  0x6e   :  { %495 = vmatpush.msra.mxu0 %v188_v2  ;;  %514 = vmatpush.msra.mxu1 %v205_v3  ;;  %v253_v2 = vld [vmem:[#allocation4 + $0x608] sm:$0xff]  ;;  %v270_v3 = vld [vmem:[#allocation4 + $0x690] sm:$0xff] }
  0x6f   :  { %535 = vmatpush.msra.mxu2 %v220_v4  ;;  %554 = vmatpush.msra.mxu3 %v237_v5  ;;  %v285_v4 = vld [vmem:[#allocation4 + $0x708] sm:$0xff]  ;;  %v302_v5 = vld [vmem:[#allocation4 + $0x790] sm:$0xff] }
  0x70   :  { %496 = vmatmul.f32.vlgmr.msra.gmra.mxu0 %v52_v6  ;;  %536 = vmatmul.f32.vlgmr.msra.gmra.mxu2 %v54_v7  ;;  %v252_v6 = vld [vmem:[#allocation4 + $0x600] sm:$0xff]  ;;  %v269_v7 = vld [vmem:[#allocation4 + $0x688] sm:$0xff] }
  0x71   :  { %560 = vmatpush.msrb.mxu0 %v267_v8  ;;  %600 = vmatpush.msrb.mxu2 %v299_v9  ;;  %v284_v8 = vld [vmem:[#allocation4 + $0x700] sm:$0xff]  ;;  %v301_v9 = vld [vmem:[#allocation4 + $0x788] sm:$0xff] }
  0x72   :  { %515 = vmatpush.msra.mxu1 %v204_v10  ;;  %555 = vmatpush.msra.mxu3 %v236_v11  ;;  %v56_v10 = vld [vmem:[#allocation2 + $0x60] sm:$0xff]  ;;  %v58_v11 = vld [vmem:[#allocation2 + $0x70] sm:$0xff] }
  0x73   :  { %516 = vmatmul.f32.vlgmr.msra.gmra.mxu1 %v53_v12  ;;  %556 = vmatmul.f32.vlgmr.msra.gmra.mxu3 %v55_v13  ;;  %v268_v12 = vld [vmem:[#allocation4 + $0x680] sm:$0xff] }
  0x74   :  { %561 = vmatpush.msrb.mxu0 %v266_v14  ;;  %580 = vmatpush.msrb.mxu1 %v283_v15  ;;  %v300_v13 = vld [vmem:[#allocation4 + $0x780] sm:$0xff]  ;;  %v57_v14 = vld [vmem:[#allocation2 + $0x68] sm:$0xff]  ;;  %v59_v15 = vld [vmem:[#allocation2 + $0x78] sm:$0xff] }
  0x75   :  { %601 = vmatpush.msrb.mxu2 %v298_v16  ;;  %620 = vmatpush.msrb.mxu3 %v315_v17  ;;  %v652_v16 = vld [vmem:[%s743_s2] ss:$0 sm:$0xff] }
  0x76   :  { %562 = vmatpush.msrb.mxu0 %v265_v18  ;;  %581 = vmatpush.msrb.mxu1 %v282_v19 }
  0x77   :  { %602 = vmatpush.msrb.mxu2 %v297_v20  ;;  %621 = vmatpush.msrb.mxu3 %v314_v21 }
  0x78   :  { %563 = vmatpush.msrb.mxu0 %v264_v22  ;;  %582 = vmatpush.msrb.mxu1 %v281_v23 }
  0x79   :  { %603 = vmatpush.msrb.mxu2 %v296_v24  ;;  %622 = vmatpush.msrb.mxu3 %v313_v25 }
  0x7a   :  { %564 = vmatpush.msrb.mxu0 %v263_v26  ;;  %583 = vmatpush.msrb.mxu1 %v280_v27 }
  0x7b   :  { %604 = vmatpush.msrb.mxu2 %v295_v28  ;;  %623 = vmatpush.msrb.mxu3 %v312_v29 }
  0x7c   :  { %565 = vmatpush.msrb.mxu0 %v262_v30  ;;  %584 = vmatpush.msrb.mxu1 %v279_v31 }
  0x7d   :  { %605 = vmatpush.msrb.mxu2 %v294_v32  ;;  %624 = vmatpush.msrb.mxu3 %v311_v33 }
  0x7e   :  { %566 = vmatpush.msrb.mxu0 %v261_v34  ;;  %585 = vmatpush.msrb.mxu1 %v278_v35 }
  0x7f   :  { %606 = vmatpush.msrb.mxu2 %v293_v36  ;;  %625 = vmatpush.msrb.mxu3 %v310_v37 }
  0x80   :  { %567 = vmatpush.msrb.mxu0 %v260_v38  ;;  %586 = vmatpush.msrb.mxu1 %v277_v39 }
  0x81   :  { %607 = vmatpush.msrb.mxu2 %v292_v40  ;;  %626 = vmatpush.msrb.mxu3 %v309_v41 }
  0x82   :  { %568 = vmatpush.msrb.mxu0 %v259_v42  ;;  %587 = vmatpush.msrb.mxu1 %v276_v43 }
  0x83   :  { %608 = vmatpush.msrb.mxu2 %v291_v44  ;;  %627 = vmatpush.msrb.mxu3 %v308_v45 }
  0x84   :  { %569 = vmatpush.msrb.mxu0 %v258_v46  ;;  %588 = vmatpush.msrb.mxu1 %v275_v47 }
  0x85   :  { %609 = vmatpush.msrb.mxu2 %v290_v48  ;;  %628 = vmatpush.msrb.mxu3 %v307_v49 }
  0x86   :  { %570 = vmatpush.msrb.mxu0 %v257_v50  ;;  %589 = vmatpush.msrb.mxu1 %v274_v51 }
  0x87   :  { %610 = vmatpush.msrb.mxu2 %v289_v52  ;;  %629 = vmatpush.msrb.mxu3 %v306_v53 }
  0x88   :  { %571 = vmatpush.msrb.mxu0 %v256_v54  ;;  %590 = vmatpush.msrb.mxu1 %v273_v55 }
  0x89   :  { %611 = vmatpush.msrb.mxu2 %v288_v56  ;;  %630 = vmatpush.msrb.mxu3 %v305_v57 }
  0x8a   :  { %572 = vmatpush.msrb.mxu0 %v255_v58  ;;  %591 = vmatpush.msrb.mxu1 %v272_v59 }
  0x8b   :  { %612 = vmatpush.msrb.mxu2 %v287_v60  ;;  %631 = vmatpush.msrb.mxu3 %v304_v61 }
  0x8c   :  { %573 = vmatpush.msrb.mxu0 %v254_v62  ;;  %592 = vmatpush.msrb.mxu1 %v271_v63 }
  0x8d   :  { %613 = vmatpush.msrb.mxu2 %v286_v0  ;;  %632 = vmatpush.msrb.mxu3 %v303_v1 }
  0x8e   :  { %574 = vmatpush.msrb.mxu0 %v253_v2  ;;  %593 = vmatpush.msrb.mxu1 %v270_v3 }
  0x8f   :  { %614 = vmatpush.msrb.mxu2 %v285_v4  ;;  %633 = vmatpush.msrb.mxu3 %v302_v5 }
  0x90   :  { %575 = vmatpush.msrb.mxu0 %v252_v6  ;;  %594 = vmatpush.msrb.mxu1 %v269_v7 }
  0x91   :  { %615 = vmatpush.msrb.mxu2 %v284_v8  ;;  %634 = vmatpush.msrb.mxu3 %v301_v9 }
  0x92   :  { %576 = vmatmul.f32.vlgmr.msrb.gmra.mxu0 %v56_v10  ;;  %616 = vmatmul.f32.vlgmr.msrb.gmra.mxu2 %v58_v11 }
  0x93   :  { %595 = vmatpush.msrb.mxu1 %v268_v12  ;;  %635 = vmatpush.msrb.mxu3 %v300_v13 }
  0x94   :  { %596 = vmatmul.f32.vlgmr.msrb.gmra.mxu1 %v57_v14  ;;  %636 = vmatmul.f32.vlgmr.msrb.gmra.mxu3 %v59_v15 }
  0xc9   :  { %v337_v17 = vpop.f32.mrf.mxu0 }
  0xca   :  { %v338_v18 = vadd.f32 %v652_v16, %v337_v17 }
  0xcc   :  { %v357_v19 = vpop.f32.mrf.mxu1 }
  0xcd   :  { %v358_v20 = vadd.f32 %v357_v19, %v338_v18 }
  0xcf   :  { %v377_v21 = vpop.f32.mrf.mxu2 }
  0xd0   :  { %v378_v22 = vadd.f32 %v377_v21, %v358_v20 }
  0xd2   :  { %v397_v23 = vpop.f32.mrf.mxu3 }
  0xd3   :  { %v398_v24 = vadd.f32 %v397_v23, %v378_v22 }
  0xd5   :  { %v417_v25 = vpop.f32.mrf.mxu0 }
  0xd6   :  { %v418_v26 = vadd.f32 %v417_v25, %v398_v24 }
  0xd8   :  { %v437_v27 = vpop.f32.mrf.mxu1 }
  0xd9   :  { %v438_v28 = vadd.f32 %v437_v27, %v418_v26  ;;  %v457_v29 = vpop.f32.mrf.mxu2 }
  0xdb   :  { %v458_v30 = vadd.f32 %v457_v29, %v438_v28 }
  0xdc   :  { %v477_v31 = vpop.f32.mrf.mxu3 }
  0xdd   :  { %v478_v33 = vadd.f32 %v477_v31, %v458_v30 }
  0xed   :  { %v497_v32 = vpop.f32.mrf.mxu0 }
  0xee   :  { %v498_v34 = vadd.f32 %v497_v32, %v478_v33 }
  0xf0   :  { %v517_v35 = vpop.f32.mrf.mxu1 }
  0xf1   :  { %v518_v37 = vadd.f32 %v517_v35, %v498_v34 }
  0xf3   :  { %v537_v36 = vpop.f32.mrf.mxu2 }
  0xf4   :  { %v538_v38 = vadd.f32 %v537_v36, %v518_v37 }
  0xf6   :  { %v557_v39 = vpop.f32.mrf.mxu3 }
  0xf7   :  { %v558_v40 = vadd.f32 %v557_v39, %v538_v38 }
 0x10f   :  { %v577_v41 = vpop.f32.mrf.mxu0 }
 0x110   :  { %v578_v42 = vadd.f32 %v577_v41, %v558_v40 }
 0x111   :  { %v597_v43 = vpop.f32.mrf.mxu1 }
 0x112   :  { %v598_v44 = vadd.f32 %v597_v43, %v578_v42 }
 0x115   :  { %v617_v45 = vpop.f32.mrf.mxu2 }
 0x116   :  { %v618_v46 = vadd.f32 %v617_v45, %v598_v44 }
 0x117   :  { %v637_v47 = vpop.f32.mrf.mxu3 }
 0x118   :  { %v638_v48 = vadd.f32 %v637_v47, %v618_v46 }
 0x11a   :  { %641 = vst.msk [vmem:[%s744_s3] sm:$0xff] %vm640_vm0, %v638_v48 }
 0x11b   :  { %646 = vsyncpa [#allocation3], 1 }
 0x11c   :  { %647 = vsyncpa [#allocation5], 1 }

</bundles_post_ra>
